<compile_context>
chip_gen: v7x
topology: tpu7x:2x2x1
jax: 0.10.0
libtpu: 0.0.40
codegen_flags: <defaults>
</compile_context>

<pallas_src>
import jax
import jax.numpy as jnp
from jax.experimental import pallas as pl
from jax.experimental.pallas import tpu as pltpu

PAD = 128        # lane-dense width (one full vreg lane span)
_ROW_ALIGN = 8   # sublane alignment of each section inside the parameter slab


def _round_up(n, m):
    return -(-n // m) * m


def pack_params(params):
    """Pack all weights/biases into ONE (rows, 128) f32 slab + static offsets.

    Also folds the recurrent r/z biases into the input-side bias (valid: they add
    commutatively inside the sigmoids) and lane-pads the output projection so the
    final stores are lane-dense.
    """
    S = params["w1"].shape[0]
    H = params["whh"].shape[0]
    A = params["wout"].shape[1]

    bih_fold = params["bih"].at[:, :2 * H].add(params["bhh"][:, :2 * H])
    bhh_n = params["bhh"][:, 2 * H:]
    wout_p = jnp.zeros((H, PAD), jnp.float32).at[:, :A].set(params["wout"])
    bout_p = jnp.zeros((1, PAD), jnp.float32).at[:, :A].set(params["bout"])

    entries = [
        ("w1", params["w1"]), ("b1", params["b1"]),
        ("w2", params["w2"]), ("b2", params["b2"]),
        ("wih", params["wih"]), ("bih", bih_fold),
        ("whh", params["whh"]), ("bhhn", bhh_n),
        ("wout", wout_p), ("bout", bout_p),
    ]
    offsets = {}
    sections = []
    row = 0
    for name, arr in entries:
        offsets[name] = row
        r_pad = _round_up(arr.shape[0], _ROW_ALIGN)
        sec = jnp.zeros((r_pad, PAD), jnp.float32)
        sec = sec.at[:arr.shape[0], :arr.shape[1]].set(arr.astype(jnp.float32))
        sections.append(sec)
        row += r_pad
    slab = jnp.concatenate(sections, axis=0)          # (rows, 128), ~64 KiB for states=8
    return slab, offsets, dict(S=S, H=H, A=A)


def _make_kernel(offsets, S, H, L):
    o = offsets

    def kernel(x_ref, h0_ref, w_ref, out_ref):
        # ---- static slices of the packed parameter slab (single DMA, no per-param windows) ----
        w1 = w_ref[o["w1"]:o["w1"] + S, 0:32]
        b1 = w_ref[o["b1"]:o["b1"] + 1, 0:32]
        w2 = w_ref[o["w2"]:o["w2"] + 32, 0:16]
        b2 = w_ref[o["b2"]:o["b2"] + 1, 0:16]
        wih = w_ref[o["wih"]:o["wih"] + 16, 0:3 * H]
        bih = w_ref[o["bih"]:o["bih"] + 1, 0:3 * H]
        whh = w_ref[o["whh"]:o["whh"] + H, 0:3 * H]
        bhh_n = w_ref[o["bhhn"]:o["bhhn"] + 1, 0:H]
        wout = w_ref[o["wout"]:o["wout"] + H, :]       # (H, PAD), lane-padded in wrapper
        bout = w_ref[o["bout"]:o["bout"] + 1, :]       # (1, PAD)

        # ---- MLP front-end, all timesteps at once (MXU matmuls + VPU relu) ----
        x = x_ref[...]                                                          # (L, S)
        h1 = jnp.maximum(jnp.dot(x, w1, preferred_element_type=jnp.float32) + b1, 0.0)   # (L, 32)
        h2 = jnp.maximum(jnp.dot(h1, w2, preferred_element_type=jnp.float32) + b2, 0.0)  # (L, 16)

        # ---- fused input-side gate projection, gate order (r, z, n); bih has bhh_r/z folded ----
        gi = jnp.dot(h2, wih, preferred_element_type=jnp.float32) + bih        # (L, 3H)
        gi_rz = gi[:, 0:2 * H]        # hoisted lane slices (no per-step re-slicing)
        gi_n = gi[:, 2 * H:3 * H]

        # ---- fully-unrolled sequential GRU recurrence (L static -> static slices only) ----
        # TODO(synk): hold whh weight-stationary in the MXU across the L dependent steps
        # (pltpu.matmul_push_rhs / matmul_acc_lhs / matmul_pop) to avoid re-streaming the
        # RHS per step; kept as jnp.dot here for portable, known-good lowering.
        h = h0_ref[...]                                                          # (1, H)
        rows = []
        for t in range(L):
            gh = jnp.dot(h, whh, preferred_element_type=jnp.float32)            # (1, 3H)
            # single EUP sigmoid push covering both r and z
            rz = jax.nn.sigmoid(gi_rz[t:t + 1, :] + gh[:, 0:2 * H])             # (1, 2H)
            r = rz[:, 0:H]
            z = rz[:, H:2 * H]
            n = jnp.tanh(gi_n[t:t + 1, :] + r * (gh[:, 2 * H:3 * H] + bhh_n))
            h = (1.0 - z) * n + z * h
            rows.append(h)

        gru_out = jnp.concatenate(rows, axis=0)                                   # (L, H)

        # ---- lane-dense packed output slab: rows 0..L-1 = Q-values (padded), row L = hidden ----
        out = jnp.dot(gru_out, wout, preferred_element_type=jnp.float32) + bout  # (L, PAD)
        out_ref[0:L, :] = out
        out_ref[L:L + 1, :] = jnp.concatenate(
            [h, jnp.zeros((1, PAD - H), jnp.float32)], axis=1)

    return kernel


def _net_pallas(xb, h0b, slab, offsets, dims):
    """Batched pallas_call: grid over sequences, weight slab shared across grid steps."""
    B, L, S = xb.shape
    H = dims["H"]
    rows = slab.shape[0]
    kernel = _make_kernel(offsets, S, H, L)
    return pl.pallas_call(
        kernel,
        out_shape=jax.ShapeDtypeStruct((B, L + 1, PAD), jnp.float32),
        grid=(B,),
        in_specs=[
            pl.BlockSpec((pl.Squeezed(), L, S), lambda b: (b, 0, 0)),
            pl.BlockSpec((pl.Squeezed(), 1, H), lambda b: (b, 0, 0)),
            pl.BlockSpec((rows, PAD), lambda b: (0, 0)),     # same block every step
        ],
        out_specs=pl.BlockSpec((pl.Squeezed(), L + 1, PAD), lambda b: (b, 0, 0)),
        compiler_params=pltpu.CompilerParams(
            dimension_semantics=("parallel",)),               # shard sequences across TCs
    )(xb, h0b, slab)


def net_forward(x, params, prev_hidden=None):
    """Unbatched forward, matching the torch module: x (L, states), prev_hidden (1, hidden)."""
    L, _ = x.shape
    slab, offsets, dims = pack_params(params)
    H, A = dims["H"], dims["A"]
    if prev_hidden is None:
        prev_hidden = jnp.zeros((1, H), jnp.float32)      # same default as the torch module
    slab_out = _net_pallas(x[None], prev_hidden[None], slab, offsets, dims)
    return slab_out[0, :L, :A], slab_out[0, L:L + 1, :H]


def net_forward_batched(xb, params, prev_hidden=None):
    """Batched rollout helper: xb (B, L, states), prev_hidden (B, 1, hidden).

    Same per-sequence math as net_forward; independent sequences run as parallel grid steps.
    """
    B, L, _ = xb.shape
    slab, offsets, dims = pack_params(params)
    H, A = dims["H"], dims["A"]
    if prev_hidden is None:
        prev_hidden = jnp.zeros((B, 1, H), jnp.float32)
    slab_out = _net_pallas(xb, prev_hidden, slab, offsets, dims)
    return slab_out[:, :L, :A], slab_out[:, L:L + 1, :H]


def init_params(key, states, actions, hidden=16):
    """Deterministic init mimicking PyTorch's uniform(-1/sqrt(fan_in), +), packed layout."""
    # The torch Net feeds the GRU output (width hidden) into Linear(16, actions),
    # so it is only well-defined when hidden == 16 (its default).
    assert hidden == 16, "original torch Net requires hidden_size == 16"

    def uni(k, shape, fan_in):
        bound = 1.0 / jnp.sqrt(jnp.float32(fan_in))
        return jax.random.uniform(k, shape, jnp.float32, -bound, bound)

    ks = jax.random.split(key, 10)
    return {
        # Linear weights stored transposed (in, out) so the kernel does x @ W.
        "w1":   uni(ks[0], (states, 32), states),
        "b1":   uni(ks[1], (1, 32), states),
        "w2":   uni(ks[2], (32, 16), 32),
        "b2":   uni(ks[3], (1, 16), 32),
        # GRU params packed along the last dim, gate order (r, z, n).
        "wih":  uni(ks[4], (16, 3 * hidden), hidden),
        "bih":  uni(ks[5], (1, 3 * hidden), hidden),
        "whh":  uni(ks[6], (hidden, 3 * hidden), hidden),
        "bhh":  uni(ks[7], (1, 3 * hidden), hidden),
        "wout": uni(ks[8], (16, actions), 16),
        "bout": uni(ks[9], (1, actions), 16),
    }


def net_reference(x, params, prev_hidden):
    """Pure-JAX reference of the exact PyTorch forward semantics (packed layout)."""
    H = params["whh"].shape[0]
    h1 = jnp.maximum(x @ params["w1"] + params["b1"], 0.0)
    h2 = jnp.maximum(h1 @ params["w2"] + params["b2"], 0.0)
    gi = h2 @ params["wih"] + params["bih"]
    h = prev_hidden
    outs = []
    for t in range(x.shape[0]):
        gh = h @ params["whh"] + params["bhh"]
        r = jax.nn.sigmoid(gi[t:t + 1, :H] + gh[:, :H])
        z = jax.nn.sigmoid(gi[t:t + 1, H:2 * H] + gh[:, H:2 * H])
        n = jnp.tanh(gi[t:t + 1, 2 * H:] + r * gh[:, 2 * H:])
        h = (1.0 - z) * n + z * h
        outs.append(h)
    gru = jnp.concatenate(outs, axis=0)
    return gru @ params["wout"] + params["bout"], h


if __name__ == "__main__":
    STATES, ACTIONS, HIDDEN, SEQ, BATCH = 8, 4, 16, 8, 4

    key = jax.random.PRNGKey(0)
    params = init_params(key, STATES, ACTIONS, HIDDEN)

    # --- unbatched call (exact torch-module semantics; prev_hidden=None -> zeros) ---
    x = jax.random.normal(jax.random.fold_in(key, 99), (SEQ, STATES), jnp.float32)
    out, hn = jax.block_until_ready(net_forward(x, params))
    ref_out, ref_hn = net_reference(x, params, jnp.zeros((1, HIDDEN), jnp.float32))
    assert out.shape == (SEQ, ACTIONS) and hn.shape == (1, HIDDEN)
    assert jnp.allclose(out, ref_out, atol=1e-5, rtol=1e-5)
    assert jnp.allclose(hn, ref_hn, atol=1e-5, rtol=1e-5)

    # --- batched rollout call (parallel grid axis over sequences) ---
    xb = jax.random.normal(jax.random.fold_in(key, 7), (BATCH, SEQ, STATES), jnp.float32)
    outs_b, hns_b = jax.block_until_ready(net_forward_batched(xb, params))
    assert outs_b.shape == (BATCH, SEQ, ACTIONS) and hns_b.shape == (BATCH, 1, HIDDEN)
    for b in range(BATCH):
        r_out, r_hn = net_reference(xb[b], params, jnp.zeros((1, HIDDEN), jnp.float32))
        assert jnp.allclose(outs_b[b], r_out, atol=1e-5, rtol=1e-5)
        assert jnp.allclose(hns_b[b], r_hn, atol=1e-5, rtol=1e-5)

    print("KERNEL_OK")
</pallas_src>

<mosaic_0001>
module attributes {stable_mosaic.version = 11 : i64} {
  func.func @kernel(%arg0: i32, %arg1: memref<1x8x8xf32, #tpu.memory_space<vmem>>, %arg2: memref<1x1x16xf32, #tpu.memory_space<vmem>>, %arg3: memref<128x128xf32, #tpu.memory_space<vmem>>, %arg4: memref<1x9x128xf32, #tpu.memory_space<vmem>>) attributes {dimension_semantics = [#tpu.dimension_semantics<parallel>], iteration_bounds = array<i64: 1>, scalar_prefetch = 0 : i64, scratch_operands = 0 : i64, tpu.core_type = #tpu.core_type<tc>, window_params = [{transform_indices = @transform_0, window_bounds = array<i64: 1, 8, 8>}, {transform_indices = @transform_1, window_bounds = array<i64: 1, 1, 16>}, {pipeline_mode = #tpu.pipeline_mode<synchronous>, transform_indices = @transform_2, window_bounds = array<i64: 128, 128>}, {transform_indices = @transform_3, window_bounds = array<i64: 1, 9, 128>}]} {
    %c0 = arith.constant 0 : index
    %c0_0 = arith.constant 0 : index
    %0 = vector.load %arg3[%c0, %c0_0] : memref<128x128xf32, #tpu.memory_space<vmem>>, vector<8x32xf32>
    %c8 = arith.constant 8 : index
    %c0_1 = arith.constant 0 : index
    %1 = vector.load %arg3[%c8, %c0_1] : memref<128x128xf32, #tpu.memory_space<vmem>>, vector<1x32xf32>
    %c16 = arith.constant 16 : index
    %c0_2 = arith.constant 0 : index
    %2 = vector.load %arg3[%c16, %c0_2] : memref<128x128xf32, #tpu.memory_space<vmem>>, vector<32x16xf32>
    %c48 = arith.constant 48 : index
    %c0_3 = arith.constant 0 : index
    %3 = vector.load %arg3[%c48, %c0_3] : memref<128x128xf32, #tpu.memory_space<vmem>>, vector<1x16xf32>
    %c56 = arith.constant 56 : index
    %c0_4 = arith.constant 0 : index
    %4 = vector.load %arg3[%c56, %c0_4] : memref<128x128xf32, #tpu.memory_space<vmem>>, vector<16x48xf32>
    %c72 = arith.constant 72 : index
    %c0_5 = arith.constant 0 : index
    %5 = vector.load %arg3[%c72, %c0_5] : memref<128x128xf32, #tpu.memory_space<vmem>>, vector<1x48xf32>
    %c80 = arith.constant 80 : index
    %c0_6 = arith.constant 0 : index
    %6 = vector.load %arg3[%c80, %c0_6] : memref<128x128xf32, #tpu.memory_space<vmem>>, vector<16x48xf32>
    %c96 = arith.constant 96 : index
    %c0_7 = arith.constant 0 : index
    %7 = vector.load %arg3[%c96, %c0_7] : memref<128x128xf32, #tpu.memory_space<vmem>>, vector<1x16xf32>
    %c104 = arith.constant 104 : index
    %c0_8 = arith.constant 0 : index
    %8 = vector.load %arg3[%c104, %c0_8] : memref<128x128xf32, #tpu.memory_space<vmem>>, vector<16x128xf32>
    %c120 = arith.constant 120 : index
    %c0_9 = arith.constant 0 : index
    %9 = vector.load %arg3[%c120, %c0_9] : memref<128x128xf32, #tpu.memory_space<vmem>>, vector<1x128xf32>
    %c0_10 = arith.constant 0 : index
    %c0_11 = arith.constant 0 : index
    %c0_12 = arith.constant 0 : index
    %10 = vector.load %arg1[%c0_10, %c0_11, %c0_12] : memref<1x8x8xf32, #tpu.memory_space<vmem>>, vector<1x8x8xf32>
    %11 = vector.shape_cast %10 : vector<1x8x8xf32> to vector<8x8xf32>
    %cst = arith.constant dense<0.000000e+00> : vector<8x32xf32>
    %12 = tpu.matmul %11, %0, %cst {dimension_numbers = #tpu.dot_dimension_numbers<[1], [0], [0], [1], [0, 0, 1, 1], [], []>} : vector<8x8xf32>, vector<8x32xf32>, vector<8x32xf32> -> vector<8x32xf32>
    %13 = vector.broadcast %1 : vector<1x32xf32> to vector<8x32xf32>
    %14 = arith.addf %12, %13 : vector<8x32xf32>
    %cst_13 = arith.constant 0.000000e+00 : f32
    %15 = vector.broadcast %cst_13 : f32 to vector<8x32xf32>
    %16 = arith.maximumf %14, %15 : vector<8x32xf32>
    %cst_14 = arith.constant dense<0.000000e+00> : vector<8x16xf32>
    %17 = tpu.matmul %16, %2, %cst_14 {dimension_numbers = #tpu.dot_dimension_numbers<[1], [0], [0], [1], [0, 0, 1, 1], [], []>} : vector<8x32xf32>, vector<32x16xf32>, vector<8x16xf32> -> vector<8x16xf32>
    %18 = vector.broadcast %3 : vector<1x16xf32> to vector<8x16xf32>
    %19 = arith.addf %17, %18 : vector<8x16xf32>
    %cst_15 = arith.constant 0.000000e+00 : f32
    %20 = vector.broadcast %cst_15 : f32 to vector<8x16xf32>
    %21 = arith.maximumf %19, %20 : vector<8x16xf32>
    %cst_16 = arith.constant dense<0.000000e+00> : vector<8x48xf32>
    %22 = tpu.matmul %21, %4, %cst_16 {dimension_numbers = #tpu.dot_dimension_numbers<[1], [0], [0], [1], [0, 0, 1, 1], [], []>} : vector<8x16xf32>, vector<16x48xf32>, vector<8x48xf32> -> vector<8x48xf32>
    %23 = vector.broadcast %5 : vector<1x48xf32> to vector<8x48xf32>
    %24 = arith.addf %22, %23 : vector<8x48xf32>
    %25 = vector.extract_strided_slice %24 {offsets = [0, 0], sizes = [8, 32], strides = [1, 1]} : vector<8x48xf32> to vector<8x32xf32>
    %26 = vector.extract_strided_slice %24 {offsets = [0, 32], sizes = [8, 16], strides = [1, 1]} : vector<8x48xf32> to vector<8x16xf32>
    %c0_17 = arith.constant 0 : index
    %c0_18 = arith.constant 0 : index
    %c0_19 = arith.constant 0 : index
    %27 = vector.load %arg2[%c0_17, %c0_18, %c0_19] : memref<1x1x16xf32, #tpu.memory_space<vmem>>, vector<1x1x16xf32>
    %28 = vector.shape_cast %27 : vector<1x1x16xf32> to vector<1x16xf32>
    %cst_20 = arith.constant dense<0.000000e+00> : vector<1x48xf32>
    %29 = tpu.matmul %28, %6, %cst_20 {dimension_numbers = #tpu.dot_dimension_numbers<[1], [0], [0], [1], [0, 0, 1, 1], [], []>} : vector<1x16xf32>, vector<16x48xf32>, vector<1x48xf32> -> vector<1x48xf32>
    %30 = vector.extract_strided_slice %25 {offsets = [0, 0], sizes = [1, 32], strides = [1, 1]} : vector<8x32xf32> to vector<1x32xf32>
    %31 = vector.extract_strided_slice %29 {offsets = [0, 0], sizes = [1, 32], strides = [1, 1]} : vector<1x48xf32> to vector<1x32xf32>
    %32 = arith.addf %30, %31 : vector<1x32xf32>
    %33 = arith.negf %32 : vector<1x32xf32>
    %34 = math.exp %33 : vector<1x32xf32>
    %cst_21 = arith.constant 1.000000e+00 : f32
    %35 = vector.broadcast %cst_21 : f32 to vector<1x32xf32>
    %36 = arith.addf %35, %34 : vector<1x32xf32>
    %37 = arith.divf %35, %36 : vector<1x32xf32>
    %38 = vector.extract_strided_slice %37 {offsets = [0, 0], sizes = [1, 16], strides = [1, 1]} : vector<1x32xf32> to vector<1x16xf32>
    %39 = vector.extract_strided_slice %37 {offsets = [0, 16], sizes = [1, 16], strides = [1, 1]} : vector<1x32xf32> to vector<1x16xf32>
    %40 = vector.extract_strided_slice %26 {offsets = [0, 0], sizes = [1, 16], strides = [1, 1]} : vector<8x16xf32> to vector<1x16xf32>
    %41 = vector.extract_strided_slice %29 {offsets = [0, 32], sizes = [1, 16], strides = [1, 1]} : vector<1x48xf32> to vector<1x16xf32>
    %42 = arith.addf %41, %7 : vector<1x16xf32>
    %43 = arith.mulf %38, %42 : vector<1x16xf32>
    %44 = arith.addf %40, %43 : vector<1x16xf32>
    %45 = math.tanh %44 : vector<1x16xf32>
    %cst_22 = arith.constant 1.000000e+00 : f32
    %46 = vector.broadcast %cst_22 : f32 to vector<1x16xf32>
    %47 = arith.subf %46, %39 : vector<1x16xf32>
    %48 = arith.mulf %47, %45 : vector<1x16xf32>
    %49 = arith.mulf %39, %28 : vector<1x16xf32>
    %50 = arith.addf %48, %49 : vector<1x16xf32>
    %cst_23 = arith.constant dense<0.000000e+00> : vector<1x48xf32>
    %51 = tpu.matmul %50, %6, %cst_23 {dimension_numbers = #tpu.dot_dimension_numbers<[1], [0], [0], [1], [0, 0, 1, 1], [], []>} : vector<1x16xf32>, vector<16x48xf32>, vector<1x48xf32> -> vector<1x48xf32>
    %52 = vector.extract_strided_slice %25 {offsets = [1, 0], sizes = [1, 32], strides = [1, 1]} : vector<8x32xf32> to vector<1x32xf32>
    %53 = vector.extract_strided_slice %51 {offsets = [0, 0], sizes = [1, 32], strides = [1, 1]} : vector<1x48xf32> to vector<1x32xf32>
    %54 = arith.addf %52, %53 : vector<1x32xf32>
    %55 = arith.negf %54 : vector<1x32xf32>
    %56 = math.exp %55 : vector<1x32xf32>
    %cst_24 = arith.constant 1.000000e+00 : f32
    %57 = vector.broadcast %cst_24 : f32 to vector<1x32xf32>
    %58 = arith.addf %57, %56 : vector<1x32xf32>
    %59 = arith.divf %57, %58 : vector<1x32xf32>
    %60 = vector.extract_strided_slice %59 {offsets = [0, 0], sizes = [1, 16], strides = [1, 1]} : vector<1x32xf32> to vector<1x16xf32>
    %61 = vector.extract_strided_slice %59 {offsets = [0, 16], sizes = [1, 16], strides = [1, 1]} : vector<1x32xf32> to vector<1x16xf32>
    %62 = vector.extract_strided_slice %26 {offsets = [1, 0], sizes = [1, 16], strides = [1, 1]} : vector<8x16xf32> to vector<1x16xf32>
    %63 = vector.extract_strided_slice %51 {offsets = [0, 32], sizes = [1, 16], strides = [1, 1]} : vector<1x48xf32> to vector<1x16xf32>
    %64 = arith.addf %63, %7 : vector<1x16xf32>
    %65 = arith.mulf %60, %64 : vector<1x16xf32>
    %66 = arith.addf %62, %65 : vector<1x16xf32>
    %67 = math.tanh %66 : vector<1x16xf32>
    %cst_25 = arith.constant 1.000000e+00 : f32
    %68 = vector.broadcast %cst_25 : f32 to vector<1x16xf32>
    %69 = arith.subf %68, %61 : vector<1x16xf32>
    %70 = arith.mulf %69, %67 : vector<1x16xf32>
    %71 = arith.mulf %61, %50 : vector<1x16xf32>
    %72 = arith.addf %70, %71 : vector<1x16xf32>
    %cst_26 = arith.constant dense<0.000000e+00> : vector<1x48xf32>
    %73 = tpu.matmul %72, %6, %cst_26 {dimension_numbers = #tpu.dot_dimension_numbers<[1], [0], [0], [1], [0, 0, 1, 1], [], []>} : vector<1x16xf32>, vector<16x48xf32>, vector<1x48xf32> -> vector<1x48xf32>
    %74 = vector.extract_strided_slice %25 {offsets = [2, 0], sizes = [1, 32], strides = [1, 1]} : vector<8x32xf32> to vector<1x32xf32>
    %75 = vector.extract_strided_slice %73 {offsets = [0, 0], sizes = [1, 32], strides = [1, 1]} : vector<1x48xf32> to vector<1x32xf32>
    %76 = arith.addf %74, %75 : vector<1x32xf32>
    %77 = arith.negf %76 : vector<1x32xf32>
    %78 = math.exp %77 : vector<1x32xf32>
    %cst_27 = arith.constant 1.000000e+00 : f32
    %79 = vector.broadcast %cst_27 : f32 to vector<1x32xf32>
    %80 = arith.addf %79, %78 : vector<1x32xf32>
    %81 = arith.divf %79, %80 : vector<1x32xf32>
    %82 = vector.extract_strided_slice %81 {offsets = [0, 0], sizes = [1, 16], strides = [1, 1]} : vector<1x32xf32> to vector<1x16xf32>
    %83 = vector.extract_strided_slice %81 {offsets = [0, 16], sizes = [1, 16], strides = [1, 1]} : vector<1x32xf32> to vector<1x16xf32>
    %84 = vector.extract_strided_slice %26 {offsets = [2, 0], sizes = [1, 16], strides = [1, 1]} : vector<8x16xf32> to vector<1x16xf32>
    %85 = vector.extract_strided_slice %73 {offsets = [0, 32], sizes = [1, 16], strides = [1, 1]} : vector<1x48xf32> to vector<1x16xf32>
    %86 = arith.addf %85, %7 : vector<1x16xf32>
    %87 = arith.mulf %82, %86 : vector<1x16xf32>
    %88 = arith.addf %84, %87 : vector<1x16xf32>
    %89 = math.tanh %88 : vector<1x16xf32>
    %cst_28 = arith.constant 1.000000e+00 : f32
    %90 = vector.broadcast %cst_28 : f32 to vector<1x16xf32>
    %91 = arith.subf %90, %83 : vector<1x16xf32>
    %92 = arith.mulf %91, %89 : vector<1x16xf32>
    %93 = arith.mulf %83, %72 : vector<1x16xf32>
    %94 = arith.addf %92, %93 : vector<1x16xf32>
    %cst_29 = arith.constant dense<0.000000e+00> : vector<1x48xf32>
    %95 = tpu.matmul %94, %6, %cst_29 {dimension_numbers = #tpu.dot_dimension_numbers<[1], [0], [0], [1], [0, 0, 1, 1], [], []>} : vector<1x16xf32>, vector<16x48xf32>, vector<1x48xf32> -> vector<1x48xf32>
    %96 = vector.extract_strided_slice %25 {offsets = [3, 0], sizes = [1, 32], strides = [1, 1]} : vector<8x32xf32> to vector<1x32xf32>
    %97 = vector.extract_strided_slice %95 {offsets = [0, 0], sizes = [1, 32], strides = [1, 1]} : vector<1x48xf32> to vector<1x32xf32>
    %98 = arith.addf %96, %97 : vector<1x32xf32>
    %99 = arith.negf %98 : vector<1x32xf32>
    %100 = math.exp %99 : vector<1x32xf32>
    %cst_30 = arith.constant 1.000000e+00 : f32
    %101 = vector.broadcast %cst_30 : f32 to vector<1x32xf32>
    %102 = arith.addf %101, %100 : vector<1x32xf32>
    %103 = arith.divf %101, %102 : vector<1x32xf32>
    %104 = vector.extract_strided_slice %103 {offsets = [0, 0], sizes = [1, 16], strides = [1, 1]} : vector<1x32xf32> to vector<1x16xf32>
    %105 = vector.extract_strided_slice %103 {offsets = [0, 16], sizes = [1, 16], strides = [1, 1]} : vector<1x32xf32> to vector<1x16xf32>
    %106 = vector.extract_strided_slice %26 {offsets = [3, 0], sizes = [1, 16], strides = [1, 1]} : vector<8x16xf32> to vector<1x16xf32>
    %107 = vector.extract_strided_slice %95 {offsets = [0, 32], sizes = [1, 16], strides = [1, 1]} : vector<1x48xf32> to vector<1x16xf32>
    %108 = arith.addf %107, %7 : vector<1x16xf32>
    %109 = arith.mulf %104, %108 : vector<1x16xf32>
    %110 = arith.addf %106, %109 : vector<1x16xf32>
    %111 = math.tanh %110 : vector<1x16xf32>
    %cst_31 = arith.constant 1.000000e+00 : f32
    %112 = vector.broadcast %cst_31 : f32 to vector<1x16xf32>
    %113 = arith.subf %112, %105 : vector<1x16xf32>
    %114 = arith.mulf %113, %111 : vector<1x16xf32>
    %115 = arith.mulf %105, %94 : vector<1x16xf32>
    %116 = arith.addf %114, %115 : vector<1x16xf32>
    %cst_32 = arith.constant dense<0.000000e+00> : vector<1x48xf32>
    %117 = tpu.matmul %116, %6, %cst_32 {dimension_numbers = #tpu.dot_dimension_numbers<[1], [0], [0], [1], [0, 0, 1, 1], [], []>} : vector<1x16xf32>, vector<16x48xf32>, vector<1x48xf32> -> vector<1x48xf32>
    %118 = vector.extract_strided_slice %25 {offsets = [4, 0], sizes = [1, 32], strides = [1, 1]} : vector<8x32xf32> to vector<1x32xf32>
    %119 = vector.extract_strided_slice %117 {offsets = [0, 0], sizes = [1, 32], strides = [1, 1]} : vector<1x48xf32> to vector<1x32xf32>
    %120 = arith.addf %118, %119 : vector<1x32xf32>
    %121 = arith.negf %120 : vector<1x32xf32>
    %122 = math.exp %121 : vector<1x32xf32>
    %cst_33 = arith.constant 1.000000e+00 : f32
    %123 = vector.broadcast %cst_33 : f32 to vector<1x32xf32>
    %124 = arith.addf %123, %122 : vector<1x32xf32>
    %125 = arith.divf %123, %124 : vector<1x32xf32>
    %126 = vector.extract_strided_slice %125 {offsets = [0, 0], sizes = [1, 16], strides = [1, 1]} : vector<1x32xf32> to vector<1x16xf32>
    %127 = vector.extract_strided_slice %125 {offsets = [0, 16], sizes = [1, 16], strides = [1, 1]} : vector<1x32xf32> to vector<1x16xf32>
    %128 = vector.extract_strided_slice %26 {offsets = [4, 0], sizes = [1, 16], strides = [1, 1]} : vector<8x16xf32> to vector<1x16xf32>
    %129 = vector.extract_strided_slice %117 {offsets = [0, 32], sizes = [1, 16], strides = [1, 1]} : vector<1x48xf32> to vector<1x16xf32>
    %130 = arith.addf %129, %7 : vector<1x16xf32>
    %131 = arith.mulf %126, %130 : vector<1x16xf32>
    %132 = arith.addf %128, %131 : vector<1x16xf32>
    %133 = math.tanh %132 : vector<1x16xf32>
    %cst_34 = arith.constant 1.000000e+00 : f32
    %134 = vector.broadcast %cst_34 : f32 to vector<1x16xf32>
    %135 = arith.subf %134, %127 : vector<1x16xf32>
    %136 = arith.mulf %135, %133 : vector<1x16xf32>
    %137 = arith.mulf %127, %116 : vector<1x16xf32>
    %138 = arith.addf %136, %137 : vector<1x16xf32>
    %cst_35 = arith.constant dense<0.000000e+00> : vector<1x48xf32>
    %139 = tpu.matmul %138, %6, %cst_35 {dimension_numbers = #tpu.dot_dimension_numbers<[1], [0], [0], [1], [0, 0, 1, 1], [], []>} : vector<1x16xf32>, vector<16x48xf32>, vector<1x48xf32> -> vector<1x48xf32>
    %140 = vector.extract_strided_slice %25 {offsets = [5, 0], sizes = [1, 32], strides = [1, 1]} : vector<8x32xf32> to vector<1x32xf32>
    %141 = vector.extract_strided_slice %139 {offsets = [0, 0], sizes = [1, 32], strides = [1, 1]} : vector<1x48xf32> to vector<1x32xf32>
    %142 = arith.addf %140, %141 : vector<1x32xf32>
    %143 = arith.negf %142 : vector<1x32xf32>
    %144 = math.exp %143 : vector<1x32xf32>
    %cst_36 = arith.constant 1.000000e+00 : f32
    %145 = vector.broadcast %cst_36 : f32 to vector<1x32xf32>
    %146 = arith.addf %145, %144 : vector<1x32xf32>
    %147 = arith.divf %145, %146 : vector<1x32xf32>
    %148 = vector.extract_strided_slice %147 {offsets = [0, 0], sizes = [1, 16], strides = [1, 1]} : vector<1x32xf32> to vector<1x16xf32>
    %149 = vector.extract_strided_slice %147 {offsets = [0, 16], sizes = [1, 16], strides = [1, 1]} : vector<1x32xf32> to vector<1x16xf32>
    %150 = vector.extract_strided_slice %26 {offsets = [5, 0], sizes = [1, 16], strides = [1, 1]} : vector<8x16xf32> to vector<1x16xf32>
    %151 = vector.extract_strided_slice %139 {offsets = [0, 32], sizes = [1, 16], strides = [1, 1]} : vector<1x48xf32> to vector<1x16xf32>
    %152 = arith.addf %151, %7 : vector<1x16xf32>
    %153 = arith.mulf %148, %152 : vector<1x16xf32>
    %154 = arith.addf %150, %153 : vector<1x16xf32>
    %155 = math.tanh %154 : vector<1x16xf32>
    %cst_37 = arith.constant 1.000000e+00 : f32
    %156 = vector.broadcast %cst_37 : f32 to vector<1x16xf32>
    %157 = arith.subf %156, %149 : vector<1x16xf32>
    %158 = arith.mulf %157, %155 : vector<1x16xf32>
    %159 = arith.mulf %149, %138 : vector<1x16xf32>
    %160 = arith.addf %158, %159 : vector<1x16xf32>
    %cst_38 = arith.constant dense<0.000000e+00> : vector<1x48xf32>
    %161 = tpu.matmul %160, %6, %cst_38 {dimension_numbers = #tpu.dot_dimension_numbers<[1], [0], [0], [1], [0, 0, 1, 1], [], []>} : vector<1x16xf32>, vector<16x48xf32>, vector<1x48xf32> -> vector<1x48xf32>
    %162 = vector.extract_strided_slice %25 {offsets = [6, 0], sizes = [1, 32], strides = [1, 1]} : vector<8x32xf32> to vector<1x32xf32>
    %163 = vector.extract_strided_slice %161 {offsets = [0, 0], sizes = [1, 32], strides = [1, 1]} : vector<1x48xf32> to vector<1x32xf32>
    %164 = arith.addf %162, %163 : vector<1x32xf32>
    %165 = arith.negf %164 : vector<1x32xf32>
    %166 = math.exp %165 : vector<1x32xf32>
    %cst_39 = arith.constant 1.000000e+00 : f32
    %167 = vector.broadcast %cst_39 : f32 to vector<1x32xf32>
    %168 = arith.addf %167, %166 : vector<1x32xf32>
    %169 = arith.divf %167, %168 : vector<1x32xf32>
    %170 = vector.extract_strided_slice %169 {offsets = [0, 0], sizes = [1, 16], strides = [1, 1]} : vector<1x32xf32> to vector<1x16xf32>
    %171 = vector.extract_strided_slice %169 {offsets = [0, 16], sizes = [1, 16], strides = [1, 1]} : vector<1x32xf32> to vector<1x16xf32>
    %172 = vector.extract_strided_slice %26 {offsets = [6, 0], sizes = [1, 16], strides = [1, 1]} : vector<8x16xf32> to vector<1x16xf32>
    %173 = vector.extract_strided_slice %161 {offsets = [0, 32], sizes = [1, 16], strides = [1, 1]} : vector<1x48xf32> to vector<1x16xf32>
    %174 = arith.addf %173, %7 : vector<1x16xf32>
    %175 = arith.mulf %170, %174 : vector<1x16xf32>
    %176 = arith.addf %172, %175 : vector<1x16xf32>
    %177 = math.tanh %176 : vector<1x16xf32>
    %cst_40 = arith.constant 1.000000e+00 : f32
    %178 = vector.broadcast %cst_40 : f32 to vector<1x16xf32>
    %179 = arith.subf %178, %171 : vector<1x16xf32>
    %180 = arith.mulf %179, %177 : vector<1x16xf32>
    %181 = arith.mulf %171, %160 : vector<1x16xf32>
    %182 = arith.addf %180, %181 : vector<1x16xf32>
    %cst_41 = arith.constant dense<0.000000e+00> : vector<1x48xf32>
    %183 = tpu.matmul %182, %6, %cst_41 {dimension_numbers = #tpu.dot_dimension_numbers<[1], [0], [0], [1], [0, 0, 1, 1], [], []>} : vector<1x16xf32>, vector<16x48xf32>, vector<1x48xf32> -> vector<1x48xf32>
    %184 = vector.extract_strided_slice %25 {offsets = [7, 0], sizes = [1, 32], strides = [1, 1]} : vector<8x32xf32> to vector<1x32xf32>
    %185 = vector.extract_strided_slice %183 {offsets = [0, 0], sizes = [1, 32], strides = [1, 1]} : vector<1x48xf32> to vector<1x32xf32>
    %186 = arith.addf %184, %185 : vector<1x32xf32>
    %187 = arith.negf %186 : vector<1x32xf32>
    %188 = math.exp %187 : vector<1x32xf32>
    %cst_42 = arith.constant 1.000000e+00 : f32
    %189 = vector.broadcast %cst_42 : f32 to vector<1x32xf32>
    %190 = arith.addf %189, %188 : vector<1x32xf32>
    %191 = arith.divf %189, %190 : vector<1x32xf32>
    %192 = vector.extract_strided_slice %191 {offsets = [0, 0], sizes = [1, 16], strides = [1, 1]} : vector<1x32xf32> to vector<1x16xf32>
    %193 = vector.extract_strided_slice %191 {offsets = [0, 16], sizes = [1, 16], strides = [1, 1]} : vector<1x32xf32> to vector<1x16xf32>
    %194 = vector.extract_strided_slice %26 {offsets = [7, 0], sizes = [1, 16], strides = [1, 1]} : vector<8x16xf32> to vector<1x16xf32>
    %195 = vector.extract_strided_slice %183 {offsets = [0, 32], sizes = [1, 16], strides = [1, 1]} : vector<1x48xf32> to vector<1x16xf32>
    %196 = arith.addf %195, %7 : vector<1x16xf32>
    %197 = arith.mulf %192, %196 : vector<1x16xf32>
    %198 = arith.addf %194, %197 : vector<1x16xf32>
    %199 = math.tanh %198 : vector<1x16xf32>
    %cst_43 = arith.constant 1.000000e+00 : f32
    %200 = vector.broadcast %cst_43 : f32 to vector<1x16xf32>
    %201 = arith.subf %200, %193 : vector<1x16xf32>
    %202 = arith.mulf %201, %199 : vector<1x16xf32>
    %203 = arith.mulf %193, %182 : vector<1x16xf32>
    %204 = arith.addf %202, %203 : vector<1x16xf32>
    %205 = tpu.concatenate %50, %72, %94, %116, %138, %160, %182, %204 in 0 : vector<1x16xf32>, vector<1x16xf32>, vector<1x16xf32>, vector<1x16xf32>, vector<1x16xf32>, vector<1x16xf32>, vector<1x16xf32>, vector<1x16xf32> -> vector<8x16xf32>
    %cst_44 = arith.constant dense<0.000000e+00> : vector<8x128xf32>
    %206 = tpu.matmul %205, %8, %cst_44 {dimension_numbers = #tpu.dot_dimension_numbers<[1], [0], [0], [1], [0, 0, 1, 1], [], []>} : vector<8x16xf32>, vector<16x128xf32>, vector<8x128xf32> -> vector<8x128xf32>
    %207 = vector.broadcast %9 : vector<1x128xf32> to vector<8x128xf32>
    %208 = arith.addf %206, %207 : vector<8x128xf32>
    %c0_45 = arith.constant 0 : index
    %c0_46 = arith.constant 0 : index
    %c0_47 = arith.constant 0 : index
    %209 = vector.load %arg4[%c0_45, %c0_46, %c0_47] : memref<1x9x128xf32, #tpu.memory_space<vmem>>, vector<1x8x128xf32>
    %210 = vector.shape_cast %209 : vector<1x8x128xf32> to vector<8x128xf32>
    %211 = vector.shape_cast %208 : vector<8x128xf32> to vector<1x8x128xf32>
    tpu.vector_store %arg4[%c0_45, %c0_46, %c0_47], %211 {strides = array<i32>} : memref<1x9x128xf32, #tpu.memory_space<vmem>>, vector<1x8x128xf32>,
    %cst_48 = arith.constant 0.000000e+00 : f32
    %212 = vector.broadcast %cst_48 : f32 to vector<1x112xf32>
    %213 = tpu.concatenate %204, %212 in 1 : vector<1x16xf32>, vector<1x112xf32> -> vector<1x128xf32>
    %c0_49 = arith.constant 0 : index
    %c8_50 = arith.constant 8 : index
    %c0_51 = arith.constant 0 : index
    %214 = vector.load %arg4[%c0_49, %c8_50, %c0_51] : memref<1x9x128xf32, #tpu.memory_space<vmem>>, vector<1x1x128xf32>
    %215 = vector.shape_cast %214 : vector<1x1x128xf32> to vector<1x128xf32>
    %216 = vector.shape_cast %213 : vector<1x128xf32> to vector<1x1x128xf32>
    tpu.vector_store %arg4[%c0_49, %c8_50, %c0_51], %216 {strides = array<i32>} : memref<1x9x128xf32, #tpu.memory_space<vmem>>, vector<1x1x128xf32>,
    return
  }
  func.func @transform_0(%arg0: i32) -> (i32, i32, i32) {
    %c0_i32 = arith.constant 0 : i32
    %c0_i32_0 = arith.constant 0 : i32
    %c0_i32_1 = arith.constant 0 : i32
    return %arg0, %c0_i32, %c0_i32_0 : i32, i32, i32
  }
  func.func @transform_1(%arg0: i32) -> (i32, i32, i32) {
    %c0_i32 = arith.constant 0 : i32
    %c0_i32_0 = arith.constant 0 : i32
    %c0_i32_1 = arith.constant 0 : i32
    return %arg0, %c0_i32, %c0_i32_0 : i32, i32, i32
  }
  func.func @transform_2(%arg0: i32) -> (i32, i32) {
    %c0_i32 = arith.constant 0 : i32
    %c0_i32_0 = arith.constant 0 : i32
    %c0_i32_1 = arith.constant 0 : i32
    return %c0_i32, %c0_i32_0 : i32, i32
  }
  func.func @transform_3(%arg0: i32) -> (i32, i32, i32) {
    %c0_i32 = arith.constant 0 : i32
    %c0_i32_0 = arith.constant 0 : i32
    %c0_i32_1 = arith.constant 0 : i32
    return %arg0, %c0_i32, %c0_i32_0 : i32, i32, i32
  }
}

</mosaic_0001>

<bundles_post_ra>
// kernel: tpu_custom_call.1
= control target key start
LH: loop header
LB: loop body
LE: loop exit
PB: predicated region body
PF: predicated region fallthrough
CT: control target
= control target key end

     0   :  { %8 = vsyncpa [#allocation3], 0  ;;  %s1759_s0 = inlined_call_operand.hbm [shape: f32[1,8,8], index: 0, kind: input, shape index: {}]   ;;  %s1760_s1 = inlined_call_operand.vmem [shape: f32[1,1,16], index: 1, kind: input, shape index: {}]   ;;  %s1761_s2 = inlined_call_operand.hbm [shape: f32[128,128], index: 2, kind: input, shape index: {}]   ;;  %s1762_s3 = inlined_call_operand.vmem [shape: f32[1,9,128], index: 3, kind: output, shape index: {}]  }
   0x1   :  { %9 = vsyncpa [#allocation5], 0  ;;  %s1563_s12 = smov [#allocation2]   ;;  %s1564_s14 = smov [#allocation4]  }
   0x2   :  { %s16_s13 = sshll.u32 %s1563_s12, 4  ;;  %s27_s15 = sshll.u32 %s1564_s14, 4  ;;  %s17_s13 = int_to_ptr.vmem [resolvable:$true] %s16_s13  ;;  %s1594_s15 = int_to_ptr.vmem [resolvable:$true] %s27_s15 }
   0x3   :  { %s1515_s18 = scalar_lea.hbm %s1759_s0, 128 }
   0x4   :  { %p1516_p0 = scmp.ne.s32.totalorder %s1759_s0, %s1515_s18  ;;  %p1519_p1 = scmp.lt.u32.totalorder %s1515_s18, %s1759_s0 }
   0x6   :  { %p1521_p2 = pnand %p1519_p1, %p1516_p0 }
   0x8   :  { %1524 = shalt.err (!%p1521_p2)
}
   0x9   :  { %s1525_s23 = scalar_lea.vmem %s17_s13, 128  ;;  %p1530_p4 = scmp.lt.s32.totalorder %s17_s13, %s17_s13 }
   0xa   :  { %p1526_p3 = scmp.ne.s32.totalorder %s17_s13, %s1525_s23  ;;  %p1531_p5 = scmp.lt.s32.totalorder %s1525_s23, %s1525_s23 }
   0xc   :  { %p1532_p6 = por %p1531_p5, %p1530_p4 }
   0xe   :  { %p1533_p7 = pnand %p1532_p6, %p1526_p3 }
  0x10   :  { %1536 = shalt.err (!%p1533_p7)
}
  0x11   :  { %19 = dma.hbm_to_vmem [thread:$0]  %s1759_s0, 128, %s17_s13, [#allocation3]  }
  0x12   :  { %s1537_s28 = scalar_lea.hbm %s1761_s2, 2048 }
  0x13   :  { %p1538_p8 = scmp.ne.s32.totalorder %s1761_s2, %s1537_s28  ;;  %p1541_p9 = scmp.lt.u32.totalorder %s1537_s28, %s1761_s2 }
  0x15   :  { %p1543_p10 = pnand %p1541_p9, %p1538_p8 }
  0x17   :  { %1546 = shalt.err (!%p1543_p10)
}
  0x18   :  { %s1547_s6 = scalar_lea.vmem %s1594_s15, 2048  ;;  %p1552_p12 = scmp.lt.s32.totalorder %s1594_s15, %s1594_s15 }
  0x19   :  { %p1548_p11 = scmp.ne.s32.totalorder %s1594_s15, %s1547_s6  ;;  %p1553_p13 = scmp.lt.s32.totalorder %s1547_s6, %s1547_s6 }
  0x1b   :  { %p1554_p0 = por %p1553_p13, %p1552_p12 }
  0x1d   :  { %p1555_p1 = pnand %p1554_p0, %p1548_p11 }
  0x1f   :  { %1558 = shalt.err (!%p1555_p1)
}
  0x20   :  { %s1565_s0 = smov 128   ;;  %s1566_s7 = smov 8  }
  0x21   :  { %33 = dma.hbm_to_vmem [thread:$0]  %s1761_s2, 2048, %s1594_s15, [#allocation5], %s1565_s0, %s1565_s0, %s1566_s7  }
  0x22   :  { %1559 = dma.done.wait [#allocation3], 128  }
  0x23   :  { %1560 = vsyncadd [#allocation3], 4294967168 }
  0x24   :  { %1561 = dma.done.wait [#allocation5], 2048  }
  0x25   :  { %1562 = vsyncadd [#allocation5], 4294965248  ;;  %v1567_v0 = vmov 0.0   ;;  %vm1568_vm0 = vmmov 0   ;;  %v1569_v1 = vmov 0.0|0.0   ;;  %vm61_vm1 = vcmask 64512  }
  0x26   :  { %1334 = vmatprep.subr.mxu0 %v1567_v0  ;;  %1336 = vmatprep.mubr.msk.f32.mxu0 %vm1568_vm0, %v1567_v0  ;;  %v40_v2 = vld [vmem:[#allocation4] sm:$0xff]  ;;  %v56_v3 = vld [vmem:[#allocation2] sm:$0xff]  ;;  %v42_v4 = vld [vmem:[#allocation4 + $0x10] sm:$0xff]  ;;  %vm140_vm2 = vcmask 261120   ;;  %s1570_s2 = smov 32   ;;  %vm219_vm3 = vcmask 130048   ;;  %v396_v28 = vlaneseq }
  0x27   :  { %1420 = vmatprep.subr.bf16.mxu1 %v1569_v1  ;;  %1347 = vmatprep.mubr.msk.f32.mxu1 %vm1568_vm0, %v1567_v0  ;;  %v43_v5 = vld [vmem:[#allocation4 + $0x18] sm:$0xff]  ;;  %v44_v7 = vld [vmem:[#allocation4 + $0x20] sm:$0xff]  ;;  %v45_v8 = vld [vmem:[#allocation4 + $0x28] sm:$0xff]  ;;  %s1572_s12 = smov 16   ;;  %s1573_s13 = smov 112   ;;  %vm1167_vm4 = vcmask 1040384  }
  0x28   :  { %1335 = vmatpush3.msra.mxu0 %v40_v2  ;;  %v1421_v6 = vpack.c.bf16 %v43_v5, %v42_v4  ;;  %v1424_v9 = vpack.c.bf16 %v45_v8, %v44_v7  ;;  %v1273_v10 = vld [vmem:[#allocation4 + $0x8] ss:$0 sm:$0xff]  ;;  %v47_v15 = vld [vmem:[#allocation4 + $0x38] sm:$0xff]  ;;  %v48_v16 = vld [vmem:[#allocation4 + $0x40] sm:$0xff]  ;;  %v397_v29 = vshrl.u32 %v396_v28, 7  ;;  %vm1169_vm5 = vcmask 1041408  }
  0x29   :  { %1337 = vmatmul.mubr.msk.f32.vlgmr.msra.gmra.mrb[0].mxu0 %vm61_vm1, %v56_v3  ;;  %1426 = vmatprep.subr.bf16.mxu0 %v1569_v1  ;;  %v1427_v17 = vpack.c.bf16 %v48_v16, %v47_v15  ;;  %v50_v18 = vld [vmem:[#allocation4 + $0x50] sm:$0xff]  ;;  %v51_v19 = vld [vmem:[#allocation4 + $0x58] sm:$0xff]  ;;  %v52_v21 = vld [vmem:[#allocation4 + $0x60] sm:$0x1]  ;;  %vm1171_vm6 = vcmask 1042432   ;;  %vm1173_vm7 = vcmask 1043456  }
  0x2a   :  { %1354 = vmatprep.mubr.msk.f32.mxu0 %vm1568_vm0, %v1567_v0  ;;  %1422 = vmatpush3.bf16.msra.mxu1 %v1421_v6  ;;  %v1639_v20 = vpack.c.bf16 %v51_v19, %v50_v18  ;;  %v1275_v22 = vld [vmem:[#allocation4 + $0x30] ss:$0 sm:$0xff]  ;;  %v293_v27 = vld [vmem:[%s1760_s1] sm:$0x1]  ;;  %v398_v33 = vsub.s32 0, %v397_v29  ;;  %s1571_s1 = smov 96  }
  0x2b   :  { %1423 = vmatprep.subr.bf16.mxu1 %v1569_v1  ;;  %1428 = vmatpush3.bf16.msra.mxu0 %v1427_v17  ;;  %v1277_v38 = vld [vmem:[#allocation4 + $0x48] ss:$0 sm:$0xff]  ;;  %vm1175_vm8 = vcmask 1044480   ;;  %vm1177_vm9 = vcmask 1045504   ;;  %vm1179_vm10 = vcmask 1046528  }
  0x2c   :  { %1429 = vmatprep.subr.bf16.mxu0 %v1569_v1  ;;  %375 = vrot.lane.b32.xlu0 %v52_v21, %s1570_s2  ;;  %v399_v37 = vrot.slane %v293_v27, %v398_v33 }
  0x2e   :  { %1425 = vmatpush3.bf16.msra.mxu1 %v1424_v9 }
  0x2f   :  { %1432 = vmatprep.subr.bf16.mxu1 %v1569_v1 }
  0x9e   :  { %v1657_v32 = vpop.permute.xlu0 %375 }
  0xfc   :  { %v131_v11 = vpop.f32.mrb[0].mxu0 }
  0xfd   :  { %v132_v12 = vadd.f32 %v1273_v10, %v131_v11  ;;  %v1338_v13 = vpop.f32.mrb[1].mxu0 }
  0xff   :  { %v135_v14 = vmax.f32 %v132_v12, 0.0 }
 0x101   :  { %1348 = vmatmul.mubr.msk.f32.vlgmr.msra.gmra.mrb[0].mxu1 %vm140_vm2, %v135_v14 }
 0x102   :  { %1368 = vmatprep.mubr.msk.f32.mxu1 %vm1568_vm0, %v1567_v0  ;;  %1434 = vmatpush3.bf16.msra.mxu1 %v1639_v20 }
 0x103   :  { %1438 = vmatprep.subr.bf16.mxu1 %v1569_v1 }
 0x1d4   :  { %v210_v23 = vpop.f32.mrb[0].mxu1 }
 0x1d5   :  { %v211_v24 = vadd.f32 %v1275_v22, %v210_v23  ;;  %v1349_v25 = vpop.f32.mrb[1].mxu1 }
 0x1d7   :  { %v214_v26 = vmax.f32 %v211_v24, 0.0 }
 0x1d9   :  { %1355 = vmatmul.mubr.msk.f32.vlgmr.msra.gmra.mrb[2].mxu0 %vm219_vm3, %v214_v26 }
 0x1da   :  { %1431 = vmatpush3.bf16.msra.mxu0 %v1639_v20  ;;  %1361 = vmatprep.mubr.msk.f32.mxu0 %vm1568_vm0, %v1567_v0 }
 0x1db   :  { %1435 = vmatprep.subr.bf16.mxu0 %v1569_v1 }
 0x1dd   :  { %1362 = vmatmul.mubr.msk.f32.vlgmr.msra.gmra.mrb[4].mxu0 %vm219_vm3, %v293_v27 }
 0x1de   :  { %1437 = vmatpush3.bf16.msra.mxu0 %v1639_v20  ;;  %1375 = vmatprep.mubr.msk.f32.mxu0 %vm1568_vm0, %v1567_v0 }
 0x1df   :  { %1441 = vmatprep.subr.bf16.mxu0 %v1569_v1 }
 0x2ac   :  { %v289_v30 = vpop.f32.mrb[2].mxu0 }
 0x2ad   :  { %v1356_v31 = vpop.f32.mrb[3].mxu0  ;;  %v1661_v39 = vadd.f32 %v1277_v38, %v289_v30 }
 0x2b0   :  { %v363_v34 = vpop.f32.mrb[4].mxu0 }
 0x2b1   :  { %v378_v35 = vadd.f32 %v1657_v32, %v363_v34  ;;  %v1363_v36 = vpop.f32.mrb[5].mxu0  ;;  %v367_v40 = vadd.f32 %v363_v34, %v1661_v39 }
 0x2b3   :  { %380 = vrot.lane.b32.xlu0 %v378_v35, %s1571_s1  ;;  %v1280_v41 = vmul.f32 -1.442695, %v367_v40 }
 0x2b5   :  { %1467 = vpow2.f32 %v1280_v41 }
 0x2b7   :  { %400 = vrot.lane.b32.xlu0 %v399_v37, %s1572_s12 }
 0x2bf   :  { %v1468_v42 = vpop.eup %1467 }
 0x2c0   :  { %v371_v43 = vadd.f32 1.0, %v1468_v42 }
 0x2c2   :  { %1469 = vrcp.f32 %v371_v43 }
 0x2cc   :  { %v1470_v44 = vpop.eup %1469 }
 0x2cd   :  { %v390_v51 = vsub.f32 1.0, %v1470_v44 }
 0x325   :  { %v381_v45 = vpop.permute.xlu0 %380 }
 0x326   :  { %v383_v46 = vmul.f32 %v1470_v44, %v381_v45 }
 0x328   :  { %385 = vrot.lane.b32.xlu1 %v383_v46, %s1570_s2 }
 0x329   :  { %v401_v50 = vpop.permute.xlu0 %400 }
 0x32a   :  { %v403_v53 = vmul.f32 %v1470_v44, %v401_v50 }
 0x39a   :  { %v386_v47 = vpop.permute.xlu1 %385 }
 0x39b   :  { %v388_v48 = vadd.f32 %v386_v47, %v1661_v39 }
 0x39d   :  { %1471 = vtanh.f32 %v388_v48 }
 0x3a7   :  { %v1472_v49 = vpop.eup %1471 }
 0x3a8   :  { %392 = vrot.lane.b32.xlu1 %v1472_v49, %s1573_s13 }
 0x41a   :  { %v393_v52 = vpop.permute.xlu1 %392 }
 0x41b   :  { %v395_v54 = vmul.f32 %v393_v52, %v390_v51 }
 0x41d   :  { %v1667_v55 = vadd.f32 %v403_v53, %v395_v54 }
 0x41f   :  { %406 = vrot.lane.b32.xlu1 %v1667_v55, %s1573_s13  ;;  %v509_v11 = vrot.slane %v1667_v55, 7 }
 0x491   :  { %v407_v56 = vpop.permute.xlu1 %406 }
 0x492   :  { %1369 = vmatmul.mubr.msk.f32.vlgmr.msra.gmra.mrb[2].mxu1 %vm219_vm3, %v407_v56 }
 0x493   :  { %1440 = vmatpush3.bf16.msra.mxu1 %v1639_v20  ;;  %1382 = vmatprep.mubr.msk.f32.mxu1 %vm1568_vm0, %v1567_v0 }
 0x494   :  { %1444 = vmatprep.subr.bf16.mxu1 %v1569_v1 }
 0x565   :  { %v476_v57 = vpop.f32.mrb[2].mxu1 }
 0x566   :  { %v490_v58 = vadd.f32 %v476_v57, %v1657_v32  ;;  %v1370_v59 = vpop.f32.mrb[3].mxu1  ;;  %v481_v61 = vrot.slane %v476_v57, 7 }
 0x568   :  { %v492_v60 = vrot.slane %v490_v58, 7  ;;  %v483_v62 = vadd.f32 %v481_v61, %v1661_v39 }
 0x56a   :  { %493 = vrot.lane.b32.xlu0 %v492_v60, %s1571_s1  ;;  %v1282_v63 = vmul.f32 -1.442695, %v483_v62 }
 0x56c   :  { %1473 = vpow2.f32 %v1282_v63 }
 0x576   :  { %v1474_v2 = vpop.eup %1473 }
 0x577   :  { %v487_v3 = vadd.f32 1.0, %v1474_v2 }
 0x579   :  { %1475 = vrcp.f32 %v487_v3 }
 0x583   :  { %v1476_v4 = vpop.eup %1475 }
 0x584   :  { %v503_v10 = vsub.f32 1.0, %v1476_v4  ;;  %v511_v14 = vmul.f32 %v1476_v4, %v509_v11 }
 0x5dc   :  { %v494_v5 = vpop.permute.xlu0 %493 }
 0x5dd   :  { %v496_v6 = vmul.f32 %v1476_v4, %v494_v5 }
 0x5df   :  { %498 = vrot.lane.b32.xlu1 %v496_v6, %s1570_s2 }
 0x651   :  { %v499_v7 = vpop.permute.xlu1 %498 }
 0x652   :  { %v501_v8 = vadd.f32 %v499_v7, %v1661_v39 }
 0x654   :  { %1477 = vtanh.f32 %v501_v8 }
 0x65e   :  { %v1478_v9 = vpop.eup %1477 }
 0x65f   :  { %505 = vrot.lane.b32.xlu0 %v1478_v9, %s1573_s13 }
 0x6d1   :  { %v506_v12 = vpop.permute.xlu0 %505 }
 0x6d2   :  { %v508_v13 = vmul.f32 %v506_v12, %v503_v10 }
 0x6d4   :  { %v512_v15 = vadd.f32 %v511_v14, %v508_v13 }
 0x6d6   :  { %v514_v16 = vrot.slane %v512_v15, 1  ;;  %v618_v36 = vrot.slane %v512_v15, 7  ;;  %v1168_v42 = vsel %vm1167_vm4, %v1667_v55, %v512_v15 }
 0x6d8   :  { %515 = vrot.lane.b32.xlu1 %v514_v16, %s1573_s13 }
 0x74a   :  { %v516_v17 = vpop.permute.xlu1 %515 }
 0x74b   :  { %1376 = vmatmul.mubr.msk.f32.vlgmr.msra.gmra.mrb[6].mxu0 %vm219_vm3, %v516_v17 }
 0x74c   :  { %1443 = vmatpush3.bf16.msra.mxu0 %v1639_v20  ;;  %1389 = vmatprep.mubr.msk.f32.mxu0 %vm1568_vm0, %v1567_v0 }
 0x74d   :  { %1447 = vmatprep.subr.bf16.mxu0 %v1569_v1 }
 0x81e   :  { %v585_v18 = vpop.f32.mrb[6].mxu0 }
 0x81f   :  { %v599_v19 = vadd.f32 %v585_v18, %v1657_v32  ;;  %v1377_v21 = vpop.f32.mrb[7].mxu0  ;;  %v590_v23 = vrot.slane %v585_v18, 6 }
 0x821   :  { %v601_v22 = vrot.slane %v599_v19, 6  ;;  %v592_v24 = vadd.f32 %v590_v23, %v1661_v39 }
 0x823   :  { %602 = vrot.lane.b32.xlu0 %v601_v22, %s1571_s1  ;;  %v1284_v25 = vmul.f32 -1.442695, %v592_v24 }
 0x825   :  { %1479 = vpow2.f32 %v1284_v25 }
 0x82f   :  { %v1480_v26 = vpop.eup %1479 }
 0x830   :  { %v596_v27 = vadd.f32 1.0, %v1480_v26 }
 0x832   :  { %1481 = vrcp.f32 %v596_v27 }
 0x83c   :  { %v1482_v28 = vpop.eup %1481 }
 0x83d   :  { %v612_v35 = vsub.f32 1.0, %v1482_v28  ;;  %v620_v38 = vmul.f32 %v1482_v28, %v618_v36 }
 0x895   :  { %v603_v29 = vpop.permute.xlu0 %602 }
 0x896   :  { %v605_v30 = vmul.f32 %v1482_v28, %v603_v29 }
 0x898   :  { %607 = vrot.lane.b32.xlu1 %v605_v30, %s1570_s2 }
 0x90a   :  { %v608_v31 = vpop.permute.xlu1 %607 }
 0x90b   :  { %v610_v33 = vadd.f32 %v608_v31, %v1661_v39 }
 0x90d   :  { %1483 = vtanh.f32 %v610_v33 }
 0x917   :  { %v1484_v34 = vpop.eup %1483 }
 0x918   :  { %614 = vrot.lane.b32.xlu0 %v1484_v34, %s1573_s13 }
 0x98a   :  { %v615_v37 = vpop.permute.xlu0 %614 }
 0x98b   :  { %v617_v40 = vmul.f32 %v615_v37, %v612_v35 }
 0x98d   :  { %v621_v41 = vadd.f32 %v620_v38, %v617_v40 }
 0x98f   :  { %v1170_v43 = vsel %vm1169_vm5, %v1168_v42, %v621_v41  ;;  %v623_v44 = vrot.slane %v621_v41, 2  ;;  %v727_v62 = vrot.slane %v621_v41, 7 }
 0x991   :  { %624 = vrot.lane.b32.xlu1 %v623_v44, %s1573_s13 }
 0xa03   :  { %v625_v45 = vpop.permute.xlu1 %624 }
 0xa04   :  { %1383 = vmatmul.mubr.msk.f32.vlgmr.msra.gmra.mrb[4].mxu1 %vm219_vm3, %v625_v45 }
 0xa05   :  { %1446 = vmatpush3.bf16.msra.mxu1 %v1639_v20  ;;  %1396 = vmatprep.mubr.msk.f32.mxu1 %vm1568_vm0, %v1567_v0 }
 0xa06   :  { %1450 = vmatprep.subr.bf16.mxu1 %v1569_v1 }
 0xad7   :  { %v694_v46 = vpop.f32.mrb[4].mxu1 }
 0xad8   :  { %v708_v47 = vadd.f32 %v694_v46, %v1657_v32  ;;  %v1384_v48 = vpop.f32.mrb[5].mxu1  ;;  %v699_v50 = vrot.slane %v694_v46, 5 }
 0xada   :  { %v710_v49 = vrot.slane %v708_v47, 5  ;;  %v701_v51 = vadd.f32 %v699_v50, %v1661_v39 }
 0xadc   :  { %711 = vrot.lane.b32.xlu0 %v710_v49, %s1571_s1  ;;  %v1286_v52 = vmul.f32 -1.442695, %v701_v51 }
 0xade   :  { %1485 = vpow2.f32 %v1286_v52 }
 0xae8   :  { %v1486_v53 = vpop.eup %1485 }
 0xae9   :  { %v705_v54 = vadd.f32 1.0, %v1486_v53 }
 0xaeb   :  { %1487 = vrcp.f32 %v705_v54 }
 0xaf5   :  { %v1488_v55 = vpop.eup %1487 }
 0xaf6   :  { %v721_v61 = vsub.f32 1.0, %v1488_v55  ;;  %v729_v2 = vmul.f32 %v1488_v55, %v727_v62 }
 0xb4e   :  { %v712_v56 = vpop.permute.xlu0 %711 }
 0xb4f   :  { %v714_v57 = vmul.f32 %v1488_v55, %v712_v56 }
 0xb51   :  { %716 = vrot.lane.b32.xlu1 %v714_v57, %s1570_s2 }
 0xbc3   :  { %v717_v58 = vpop.permute.xlu1 %716 }
 0xbc4   :  { %v719_v59 = vadd.f32 %v717_v58, %v1661_v39 }
 0xbc6   :  { %1489 = vtanh.f32 %v719_v59 }
 0xbd0   :  { %v1490_v60 = vpop.eup %1489 }
 0xbd1   :  { %723 = vrot.lane.b32.xlu0 %v1490_v60, %s1573_s13 }
 0xc43   :  { %v724_v63 = vpop.permute.xlu0 %723 }
 0xc44   :  { %v726_v3 = vmul.f32 %v724_v63, %v721_v61 }
 0xc46   :  { %v730_v4 = vadd.f32 %v729_v2, %v726_v3 }
 0xc48   :  { %v1172_v5 = vsel %vm1171_vm6, %v1170_v43, %v730_v4  ;;  %v732_v6 = vrot.slane %v730_v4, 3  ;;  %v836_v24 = vrot.slane %v730_v4, 7 }
 0xc4a   :  { %733 = vrot.lane.b32.xlu1 %v732_v6, %s1573_s13 }
 0xcbc   :  { %v734_v7 = vpop.permute.xlu1 %733 }
 0xcbd   :  { %1390 = vmatmul.mubr.msk.f32.vlgmr.msra.gmra.mrb[8].mxu0 %vm219_vm3, %v734_v7 }
 0xcbe   :  { %1449 = vmatpush3.bf16.msra.mxu0 %v1639_v20  ;;  %1403 = vmatprep.mubr.msk.f32.mxu0 %vm1568_vm0, %v1567_v0 }
 0xcbf   :  { %1453 = vmatprep.subr.bf16.mxu0 %v1569_v1 }
 0xd90   :  { %v803_v8 = vpop.f32.mrb[8].mxu0 }
 0xd91   :  { %v817_v9 = vadd.f32 %v803_v8, %v1657_v32  ;;  %v1391_v10 = vpop.f32.mrb[9].mxu0  ;;  %v808_v12 = vrot.slane %v803_v8, 4 }
 0xd93   :  { %v819_v11 = vrot.slane %v817_v9, 4  ;;  %v810_v13 = vadd.f32 %v808_v12, %v1661_v39 }
 0xd95   :  { %820 = vrot.lane.b32.xlu0 %v819_v11, %s1571_s1  ;;  %v1288_v14 = vmul.f32 -1.442695, %v810_v13 }
 0xd97   :  { %1491 = vpow2.f32 %v1288_v14 }
 0xda1   :  { %v1492_v15 = vpop.eup %1491 }
 0xda2   :  { %v814_v16 = vadd.f32 1.0, %v1492_v15 }
 0xda4   :  { %1493 = vrcp.f32 %v814_v16 }
 0xdae   :  { %v1494_v17 = vpop.eup %1493 }
 0xdaf   :  { %v830_v23 = vsub.f32 1.0, %v1494_v17  ;;  %v838_v26 = vmul.f32 %v1494_v17, %v836_v24 }
 0xe07   :  { %v821_v18 = vpop.permute.xlu0 %820 }
 0xe08   :  { %v823_v19 = vmul.f32 %v1494_v17, %v821_v18 }
 0xe0a   :  { %825 = vrot.lane.b32.xlu1 %v823_v19, %s1570_s2 }
 0xe7c   :  { %v826_v1 = vpop.permute.xlu1 %825 }
 0xe7d   :  { %v828_v21 = vadd.f32 %v826_v1, %v1661_v39 }
 0xe7f   :  { %1495 = vtanh.f32 %v828_v21 }
 0xe89   :  { %v1496_v22 = vpop.eup %1495 }
 0xe8a   :  { %832 = vrot.lane.b32.xlu0 %v1496_v22, %s1573_s13 }
 0xefc   :  { %v833_v25 = vpop.permute.xlu0 %832 }
 0xefd   :  { %v835_v27 = vmul.f32 %v833_v25, %v830_v23 }
 0xeff   :  { %v839_v28 = vadd.f32 %v838_v26, %v835_v27 }
 0xf01   :  { %v1174_v29 = vsel %vm1173_vm7, %v1172_v5, %v839_v28  ;;  %v841_v30 = vrot.slane %v839_v28, 4  ;;  %v945_v49 = vrot.slane %v839_v28, 7 }
 0xf03   :  { %842 = vrot.lane.b32.xlu1 %v841_v30, %s1573_s13 }
 0xf75   :  { %v843_v31 = vpop.permute.xlu1 %842 }
 0xf76   :  { %1397 = vmatmul.mubr.msk.f32.vlgmr.msra.gmra.mrb[6].mxu1 %vm219_vm3, %v843_v31  ;;  %v53_v31 = vld [vmem:[#allocation4 + $0x68] sm:$0xff] }
 0xf77   :  { %1452 = vmatpush3.bf16.msra.mxu1 %v1639_v20  ;;  %1410 = vmatprep.mubr.msk.f32.mxu1 %vm1568_vm0, %v1567_v0 }
0x1049   :  { %v912_v33 = vpop.f32.mrb[6].mxu1 }
0x104a   :  { %v926_v34 = vadd.f32 %v912_v33, %v1657_v32  ;;  %v1398_v35 = vpop.f32.mrb[7].mxu1  ;;  %v917_v37 = vrot.slane %v912_v33, 3  ;;  %v54_v33 = vld [vmem:[#allocation4 + $0x70] sm:$0xff] }
0x104c   :  { %v928_v36 = vrot.slane %v926_v34, 3  ;;  %v919_v38 = vadd.f32 %v917_v37, %v1661_v39  ;;  %v1454_v34 = vpack.c.bf16 %v54_v33, %v53_v31 }
0x104e   :  { %929 = vrot.lane.b32.xlu0 %v928_v36, %s1571_s1  ;;  %v1290_v40 = vmul.f32 -1.442695, %v919_v38 }
0x1050   :  { %1497 = vpow2.f32 %v1290_v40 }
0x105a   :  { %v1498_v41 = vpop.eup %1497 }
0x105b   :  { %v923_v42 = vadd.f32 1.0, %v1498_v41 }
0x105d   :  { %1499 = vrcp.f32 %v923_v42 }
0x1067   :  { %v1500_v43 = vpop.eup %1499 }
0x1068   :  { %v939_v48 = vsub.f32 1.0, %v1500_v43  ;;  %v947_v51 = vmul.f32 %v1500_v43, %v945_v49 }
0x10c0   :  { %v930_v20 = vpop.permute.xlu0 %929 }
0x10c1   :  { %v932_v44 = vmul.f32 %v1500_v43, %v930_v20 }
0x10c3   :  { %934 = vrot.lane.b32.xlu1 %v932_v44, %s1570_s2 }
0x1135   :  { %v935_v45 = vpop.permute.xlu1 %934 }
0x1136   :  { %v937_v46 = vadd.f32 %v935_v45, %v1661_v39  ;;  %v1295_v45 = vld [vmem:[#allocation4 + $0x78] ss:$0 sm:$0xff] }
0x1138   :  { %1501 = vtanh.f32 %v937_v46 }
0x1142   :  { %v1502_v47 = vpop.eup %1501 }
0x1143   :  { %941 = vrot.lane.b32.xlu0 %v1502_v47, %s1573_s13 }
0x11b5   :  { %v942_v50 = vpop.permute.xlu0 %941 }
0x11b6   :  { %v944_v52 = vmul.f32 %v942_v50, %v939_v48 }
0x11b8   :  { %v948_v53 = vadd.f32 %v947_v51, %v944_v52 }
0x11ba   :  { %v950_v54 = vrot.slane %v948_v53, 5  ;;  %v1176_v55 = vsel %vm1175_vm8, %v1174_v29, %v948_v53  ;;  %v1054_v10 = vrot.slane %v948_v53, 7 }
0x11bc   :  { %951 = vrot.lane.b32.xlu1 %v950_v54, %s1573_s13 }
0x122e   :  { %v952_v56 = vpop.permute.xlu1 %951 }
0x122f   :  { %1404 = vmatmul.mubr.msk.f32.vlgmr.msra.gmra.mrb[10].mxu0 %vm219_vm3, %v952_v56 }
0x1230   :  { %1417 = vmatprep.mubr.msk.f32.mxu0 %vm1568_vm0, %v1567_v0  ;;  %1455 = vmatpush3.bf16.msra.mxu0 %v1454_v34 }
0x1302   :  { %v1021_v57 = vpop.f32.mrb[10].mxu0 }
0x1303   :  { %v1035_v58 = vadd.f32 %v1021_v57, %v1657_v32  ;;  %v1405_v59 = vpop.f32.mrb[11].mxu0  ;;  %v1026_v61 = vrot.slane %v1021_v57, 2 }
0x1305   :  { %v1037_v60 = vrot.slane %v1035_v58, 2  ;;  %v1028_v62 = vadd.f32 %v1026_v61, %v1661_v39 }
0x1307   :  { %1038 = vrot.lane.b32.xlu0 %v1037_v60, %s1571_s1  ;;  %v1292_v63 = vmul.f32 -1.442695, %v1028_v62 }
0x1309   :  { %1503 = vpow2.f32 %v1292_v63 }
0x1313   :  { %v1504_v2 = vpop.eup %1503 }
0x1314   :  { %v1032_v3 = vadd.f32 1.0, %v1504_v2 }
0x1316   :  { %1505 = vrcp.f32 %v1032_v3 }
0x1320   :  { %v1506_v4 = vpop.eup %1505 }
0x1321   :  { %v1048_v9 = vsub.f32 1.0, %v1506_v4  ;;  %v1056_v12 = vmul.f32 %v1506_v4, %v1054_v10 }
0x1379   :  { %v1039_v5 = vpop.permute.xlu0 %1038 }
0x137a   :  { %v1041_v6 = vmul.f32 %v1506_v4, %v1039_v5 }
0x137c   :  { %1043 = vrot.lane.b32.xlu1 %v1041_v6, %s1570_s2 }
0x13ee   :  { %v1044_v0 = vpop.permute.xlu1 %1043 }
0x13ef   :  { %v1046_v7 = vadd.f32 %v1044_v0, %v1661_v39 }
0x13f1   :  { %1507 = vtanh.f32 %v1046_v7 }
0x13fb   :  { %v1508_v8 = vpop.eup %1507 }
0x13fc   :  { %1050 = vrot.lane.b32.xlu0 %v1508_v8, %s1573_s13 }
0x146e   :  { %v1051_v11 = vpop.permute.xlu0 %1050 }
0x146f   :  { %v1053_v13 = vmul.f32 %v1051_v11, %v1048_v9 }
0x1471   :  { %v1057_v14 = vadd.f32 %v1056_v12, %v1053_v13 }
0x1473   :  { %v1059_v15 = vrot.slane %v1057_v14, 6  ;;  %v1178_v16 = vsel %vm1177_vm9, %v1176_v55, %v1057_v14  ;;  %v1163_v37 = vrot.slane %v1057_v14, 7 }
0x1475   :  { %1060 = vrot.lane.b32.xlu1 %v1059_v15, %s1573_s13 }
0x14e7   :  { %v1061_v17 = vpop.permute.xlu1 %1060 }
0x14e8   :  { %1411 = vmatmul.mubr.msk.f32.vlgmr.msra.gmra.mrb[8].mxu1 %vm219_vm3, %v1061_v17 }
0x15bb   :  { %v1130_v18 = vpop.f32.mrb[8].mxu1 }
0x15bc   :  { %v1144_v19 = vadd.f32 %v1130_v18, %v1657_v32  ;;  %v1412_v1 = vpop.f32.mrb[9].mxu1  ;;  %v1135_v22 = vrot.slane %v1130_v18, 1 }
0x15be   :  { %v1146_v21 = vrot.slane %v1144_v19, 1  ;;  %v1137_v23 = vadd.f32 %v1135_v22, %v1661_v39 }
0x15c0   :  { %1147 = vrot.lane.b32.xlu0 %v1146_v21, %s1571_s1  ;;  %v1294_v24 = vmul.f32 -1.442695, %v1137_v23 }
0x15c2   :  { %1509 = vpow2.f32 %v1294_v24 }
0x15cc   :  { %v1510_v25 = vpop.eup %1509 }
0x15cd   :  { %v1141_v26 = vadd.f32 1.0, %v1510_v25 }
0x15cf   :  { %1511 = vrcp.f32 %v1141_v26 }
0x15d9   :  { %v1512_v27 = vpop.eup %1511 }
0x15da   :  { %v1157_v36 = vsub.f32 1.0, %v1512_v27  ;;  %v1165_v40 = vmul.f32 %v1512_v27, %v1163_v37 }
0x1632   :  { %v1148_v28 = vpop.permute.xlu0 %1147 }
0x1633   :  { %v1150_v29 = vmul.f32 %v1512_v27, %v1148_v28 }
0x1635   :  { %1152 = vrot.lane.b32.xlu1 %v1150_v29, %s1570_s2 }
0x16a7   :  { %v1153_v30 = vpop.permute.xlu1 %1152 }
0x16a8   :  { %v1155_v32 = vadd.f32 %v1153_v30, %v1661_v39 }
0x16aa   :  { %1513 = vtanh.f32 %v1155_v32 }
0x16b4   :  { %v1514_v35 = vpop.eup %1513 }
0x16b5   :  { %1159 = vrot.lane.b32.xlu0 %v1514_v35, %s1573_s13 }
0x1727   :  { %v1160_v38 = vpop.permute.xlu0 %1159 }
0x1728   :  { %v1162_v41 = vmul.f32 %v1160_v38, %v1157_v36 }
0x172a   :  { %v1166_v42 = vadd.f32 %v1165_v40, %v1162_v41 }
0x172c   :  { %1262 = vrot.lane.b32.xlu0 %v1166_v42, %s1573_s13  ;;  %v1180_v43 = vsel %vm1179_vm10, %v1178_v16, %v1166_v42 }
0x172d   :  { %1186 = vrot.lane.b32.xlu1 %v1180_v43, %s1573_s13 }
0x179e   :  { %v1263_v39 = vpop.permute.xlu0 %1262 }
0x179f   :  { %v1265_v20 = vsel %vm219_vm3, %v1263_v39, 0.0  ;;  %v1187_v44 = vpop.permute.xlu1 %1186 }
0x17a0   :  { %1266 = vst [vmem:[%s1762_s3 + $0x1] sm:$0x80] %v1265_v20  ;;  %1418 = vmatmul.mubr.msk.f32.vlgmr.msra.gmra.mrb[12].mxu0 %vm219_vm3, %v1187_v44 }
0x1873   :  { %v1256_v46 = vpop.f32.mrb[12].mxu0 }
0x1874   :  { %v1257_v47 = vadd.f32 %v1295_v45, %v1256_v46  ;;  %v1419_v48 = vpop.f32.mrb[13].mxu0 }
0x1876   :  { %1260 = vst [vmem:[%s1762_s3] sm:$0xff] %v1257_v47 }
0x1877   :  { %1271 = vsyncpa [#allocation3], 1 }
0x1878   :  { %1272 = vsyncpa [#allocation5], 1 }

</bundles_post_ra>
